<compile_context>
chip_gen: v6e
topology: v6e:2x2x1
jax: 0.10.0
libtpu: 0.0.40
codegen_flags: <defaults>
</compile_context>

<pallas_src>
import functools
import math

import jax
import jax.numpy as jnp
from jax.experimental import pallas as pl
from jax.experimental.pallas import tpu as pltpu


def _gcn_kernel(x_ref, w_ref, att_ref, *rest, att_first, has_bias):
    """One grid step: TB batches x one row-block of att.

    x_ref:   (TB, N, Fin)
    w_ref:   (Fin, Fout)          resident (constant index_map)
    att_ref: (Nb, N)              Nb = node-row block (full N unless tiled)
    b_ref:   (1, Fout) f32        only when has_bias
    o_ref:   (TB, Nb, Fout)
    """
    if has_bias:
        b_ref, o_ref = rest
    else:
        b_ref = None
        (o_ref,) = rest

    tb = x_ref.shape[0]
    att = att_ref[...]
    w = w_ref[...]
    if has_bias:
        # Hoist the bias broadcast out of the (static) per-batch loop:
        # JAX does not CSE broadcast_in_dim.
        bias = jnp.broadcast_to(b_ref[...], (att.shape[0], w.shape[1]))

    for b in range(tb):  # tb is a small static constant -> fully unrolled
        xb = x_ref[b]  # (N, Fin)
        if att_first:
            # (att @ x) @ W : intermediate width = Fin
            tmp = jnp.dot(att, xb, preferred_element_type=jnp.float32)
            out = jnp.dot(tmp.astype(w.dtype), w,
                          preferred_element_type=jnp.float32)
        else:
            # att @ (x @ W) : intermediate width = Fout (reference order)
            tmp = jnp.dot(xb, w, preferred_element_type=jnp.float32)
            out = jnp.dot(att, tmp.astype(att.dtype),
                          preferred_element_type=jnp.float32)
        if has_bias:
            out = out + bias
        o_ref[b] = out.astype(o_ref.dtype)


def graph_convolution(x, weight, att, bias=None, *, batch_block=None,
                      compute_dtype=None):
    """GCN layer forward.

    x: [B, N, Fin], weight: [Fin, Fout], att: [N, N], bias: [Fout] or None.
    compute_dtype: optional dtype (e.g. jnp.bfloat16) for the matmul inputs;
      accumulation stays f32. Default None keeps everything f32.
    """
    B, N, Fin = x.shape
    Fout = weight.shape[1]
    out_dtype = x.dtype
    assert weight.shape[0] == Fin and att.shape == (N, N)

    if compute_dtype is not None:
        x = x.astype(compute_dtype)
        weight = weight.astype(compute_dtype)
        att = att.astype(compute_dtype)

    # Node tiling: only needed to give v7x's 2 TensorCores work when B == 1.
    # N % 16 == 0 keeps the row block a multiple of 8 sublanes.
    if B == 1 and N >= 16 and N % 16 == 0:
        node_block = N // 2
    else:
        node_block = N
    n_node = N // node_block

    # Batch blocking: >=2 parallel grid blocks when possible (v7x megacore),
    # capped by a VMEM budget (double-buffered x/out blocks stay well inside
    # the 32 MiB default scoped VMEM on v6e/v7x) and a small static-unroll cap.
    if batch_block is None:
        in_bytes = jnp.dtype(x.dtype).itemsize
        out_bytes = jnp.dtype(out_dtype).itemsize
        per_batch = N * Fin * in_bytes + node_block * Fout * out_bytes
        vmem_cap = max(1, (8 * 1024 * 1024) // (2 * per_batch))
        target = B // 2 if B >= 2 else 1
        batch_block = max(1, min(target, vmem_cap, 8))
        while B % batch_block != 0:
            batch_block -= 1
    assert B % batch_block == 0, "batch_block must divide the batch size"
    nb = B // batch_block

    has_bias = bias is not None
    # Reassociated matmul order: keep the intermediate at min(Fin, Fout) lanes;
    # when node-tiled, att-first also avoids recomputing x@W per node block.
    att_first = (Fout > Fin) or (n_node > 1)

    kernel = functools.partial(_gcn_kernel, att_first=att_first,
                               has_bias=has_bias)

    in_specs = [
        pl.BlockSpec((batch_block, N, Fin), lambda i, j: (i, 0, 0)),
        # weight / att / bias: constant (or j-only) index_map -> VMEM-resident.
        pl.BlockSpec((Fin, Fout), lambda i, j: (0, 0)),
        pl.BlockSpec((node_block, N), lambda i, j: (j, 0)),
    ]
    inputs = [x, weight, att]
    if has_bias:
        in_specs.append(pl.BlockSpec((1, Fout), lambda i, j: (0, 0)))
        inputs.append(bias.reshape(1, Fout).astype(jnp.float32))

    grid_spec = pltpu.PrefetchScalarGridSpec(
        num_scalar_prefetch=0,
        grid=(nb, n_node),
        in_specs=in_specs,
        out_specs=pl.BlockSpec((batch_block, node_block, Fout),
                               lambda i, j: (i, j, 0)),
    )

    in_itemsize = jnp.dtype(x.dtype).itemsize
    if att_first:
        flops = 2 * B * N * N * Fin + 2 * B * N * Fin * Fout
    else:
        flops = 2 * B * N * Fin * Fout + 2 * B * N * N * Fout
    bytes_accessed = (x.size * in_itemsize
                      + weight.size * in_itemsize
                      + att.size * in_itemsize
                      + (Fout * 4 if has_bias else 0)
                      + B * N * Fout * jnp.dtype(out_dtype).itemsize)
    cost = pl.CostEstimate(flops=flops, transcendentals=0,
                           bytes_accessed=bytes_accessed)

    return pl.pallas_call(
        kernel,
        out_shape=jax.ShapeDtypeStruct((B, N, Fout), out_dtype),
        grid_spec=grid_spec,
        compiler_params=pltpu.CompilerParams(
            dimension_semantics=("parallel", "parallel"),
        ),
        cost_estimate=cost,
    )(*inputs)


def init_params(key, in_features, out_features, node_n, bias=True):
    """Deterministic init matching reset_parameters(): uniform(-stdv, stdv)."""
    stdv = 1.0 / math.sqrt(out_features)
    kw, ka, kb = jax.random.split(key, 3)
    weight = jax.random.uniform(kw, (in_features, out_features),
                                minval=-stdv, maxval=stdv, dtype=jnp.float32)
    att = jax.random.uniform(ka, (node_n, node_n),
                             minval=-stdv, maxval=stdv, dtype=jnp.float32)
    b = (jax.random.uniform(kb, (out_features,),
                            minval=-stdv, maxval=stdv, dtype=jnp.float32)
         if bias else None)
    return weight, att, b


if __name__ == "__main__":
    key = jax.random.PRNGKey(0)
    k_x, k_p = jax.random.split(key)

    # Small shapes consistent with the module: node_n=48, features 32 -> 32.
    B, N, Fin, Fout = 2, 48, 32, 32

    x = jax.random.normal(k_x, (B, N, Fin), dtype=jnp.float32)
    weight, att, bias = init_params(k_p, Fin, Fout, N, bias=True)

    # Bias path (B=2 -> grid=(2,1), one batch per step, no Fout padding).
    out = jax.block_until_ready(graph_convolution(x, weight, att, bias))
    ref = jnp.matmul(att, jnp.matmul(x, weight)) + bias
    assert out.shape == (B, N, Fout)
    assert jnp.allclose(out, ref, atol=1e-5, rtol=1e-5)

    # No-bias path (bias-free kernel, one fewer input DMA per step).
    out_nb = jax.block_until_ready(graph_convolution(x, weight, att, None))
    ref_nb = jnp.matmul(att, jnp.matmul(x, weight))
    assert jnp.allclose(out_nb, ref_nb, atol=1e-5, rtol=1e-5)

    # B=1 path: node-row tiling keeps 2 parallel grid blocks (v7x) and
    # exercises the reassociated (att@x)@W order.
    x1 = x[:1]
    out1 = jax.block_until_ready(graph_convolution(x1, weight, att, bias))
    ref1 = jnp.matmul(att, jnp.matmul(x1, weight)) + bias
    assert out1.shape == (1, N, Fout)
    assert jnp.allclose(out1, ref1, atol=1e-5, rtol=1e-5)

    print("KERNEL_OK")
</pallas_src>

<mosaic_0001>
module attributes {stable_mosaic.version = 11 : i64} {
  func.func @_gcn_kernel(%arg0: i32, %arg1: i32, %arg2: memref<1x48x32xf32, #tpu.memory_space<vmem>>, %arg3: memref<32x32xf32, #tpu.memory_space<vmem>>, %arg4: memref<48x48xf32, #tpu.memory_space<vmem>>, %arg5: memref<1x32xf32, #tpu.memory_space<vmem>>, %arg6: memref<1x48x32xf32, #tpu.memory_space<vmem>>) attributes {dimension_semantics = [#tpu.dimension_semantics<parallel>, #tpu.dimension_semantics<parallel>], iteration_bounds = array<i64: 2, 1>, scalar_prefetch = 0 : i64, scratch_operands = 0 : i64, tpu.core_type = #tpu.core_type<tc>, window_params = [{transform_indices = @transform_0, window_bounds = array<i64: 1, 48, 32>}, {pipeline_mode = #tpu.pipeline_mode<synchronous>, transform_indices = @transform_1, window_bounds = array<i64: 32, 32>}, {transform_indices = @transform_2, window_bounds = array<i64: 48, 48>}, {pipeline_mode = #tpu.pipeline_mode<synchronous>, transform_indices = @transform_3, window_bounds = array<i64: 1, 32>}, {transform_indices = @transform_4, window_bounds = array<i64: 1, 48, 32>}]} {
    %c0 = arith.constant 0 : index
    %c0_0 = arith.constant 0 : index
    %0 = vector.load %arg4[%c0, %c0_0] : memref<48x48xf32, #tpu.memory_space<vmem>>, vector<48x48xf32>
    %c0_1 = arith.constant 0 : index
    %c0_2 = arith.constant 0 : index
    %1 = vector.load %arg3[%c0_1, %c0_2] : memref<32x32xf32, #tpu.memory_space<vmem>>, vector<32x32xf32>
    %c0_3 = arith.constant 0 : index
    %c0_4 = arith.constant 0 : index
    %2 = vector.load %arg5[%c0_3, %c0_4] : memref<1x32xf32, #tpu.memory_space<vmem>>, vector<1x32xf32>
    %3 = vector.shape_cast %2 : vector<1x32xf32> to vector<1x32xf32>
    %4 = vector.broadcast %3 : vector<1x32xf32> to vector<48x32xf32>
    %c0_5 = arith.constant 0 : index
    %c0_6 = arith.constant 0 : index
    %c0_7 = arith.constant 0 : index
    %5 = vector.load %arg2[%c0_5, %c0_6, %c0_7] : memref<1x48x32xf32, #tpu.memory_space<vmem>>, vector<1x48x32xf32>
    %6 = vector.shape_cast %5 : vector<1x48x32xf32> to vector<48x32xf32>
    %cst = arith.constant dense<0.000000e+00> : vector<48x32xf32>
    %7 = tpu.matmul %6, %1, %cst {dimension_numbers = #tpu.dot_dimension_numbers<[1], [0], [0], [1], [0, 0, 1, 1], [], []>} : vector<48x32xf32>, vector<32x32xf32>, vector<48x32xf32> -> vector<48x32xf32>
    %cst_8 = arith.constant dense<0.000000e+00> : vector<48x32xf32>
    %8 = tpu.matmul %0, %7, %cst_8 {dimension_numbers = #tpu.dot_dimension_numbers<[1], [0], [0], [1], [0, 0, 1, 1], [], []>} : vector<48x48xf32>, vector<48x32xf32>, vector<48x32xf32> -> vector<48x32xf32>
    %9 = arith.addf %8, %4 : vector<48x32xf32>
    %c0_9 = arith.constant 0 : index
    %c0_10 = arith.constant 0 : index
    %c0_11 = arith.constant 0 : index
    %10 = vector.load %arg6[%c0_9, %c0_10, %c0_11] : memref<1x48x32xf32, #tpu.memory_space<vmem>>, vector<1x48x32xf32>
    %11 = vector.shape_cast %10 : vector<1x48x32xf32> to vector<48x32xf32>
    %12 = vector.shape_cast %9 : vector<48x32xf32> to vector<1x48x32xf32>
    tpu.vector_store %arg6[%c0_9, %c0_10, %c0_11], %12 {strides = array<i32>} : memref<1x48x32xf32, #tpu.memory_space<vmem>>, vector<1x48x32xf32>,
    return
  }
  func.func @transform_0(%arg0: i32, %arg1: i32) -> (i32, i32, i32) {
    %c0_i32 = arith.constant 0 : i32
    %c0_i32_0 = arith.constant 0 : i32
    %c0_i32_1 = arith.constant 0 : i32
    return %arg0, %c0_i32, %c0_i32_0 : i32, i32, i32
  }
  func.func @transform_1(%arg0: i32, %arg1: i32) -> (i32, i32) {
    %c0_i32 = arith.constant 0 : i32
    %c0_i32_0 = arith.constant 0 : i32
    %c0_i32_1 = arith.constant 0 : i32
    return %c0_i32, %c0_i32_0 : i32, i32
  }
  func.func @transform_2(%arg0: i32, %arg1: i32) -> (i32, i32) {
    %c0_i32 = arith.constant 0 : i32
    %c0_i32_0 = arith.constant 0 : i32
    return %arg1, %c0_i32 : i32, i32
  }
  func.func @transform_3(%arg0: i32, %arg1: i32) -> (i32, i32) {
    %c0_i32 = arith.constant 0 : i32
    %c0_i32_0 = arith.constant 0 : i32
    %c0_i32_1 = arith.constant 0 : i32
    return %c0_i32, %c0_i32_0 : i32, i32
  }
  func.func @transform_4(%arg0: i32, %arg1: i32) -> (i32, i32, i32) {
    %c0_i32 = arith.constant 0 : i32
    %c0_i32_0 = arith.constant 0 : i32
    return %arg0, %arg1, %c0_i32 : i32, i32, i32
  }
}

</mosaic_0001>

<bundles_post_ra>
// kernel: tpu_custom_call.1
= control target key start
LH: loop header
LB: loop body
LE: loop exit
PB: predicated region body
PF: predicated region fallthrough
CT: control target
= control target key end

     0   :  { %s753_s15 = smov 0   ;;  %s755_s16 = smov 0   ;;  %s844_s0 = inlined_call_operand.vmem [shape: f32[2,48,32], index: 0, kind: input, shape index: {}]   ;;  %s845_s1 = inlined_call_operand.vmem [shape: f32[32,32], index: 1, kind: input, shape index: {}]   ;;  %s846_s2 = inlined_call_operand.vmem [shape: f32[48,48], index: 2, kind: input, shape index: {}]   ;;  %s847_s3 = inlined_call_operand.vmem [shape: f32[1,32], index: 3, kind: input, shape index: {}]   ;;  %s848_s4 = inlined_call_operand.vmem [shape: f32[2,48,32], index: 4, kind: output, shape index: {}]  }
   0x1   :  { %s757_s17 = smov 0  }
   0x2 LB: > { %s26_s18 = sadd.s32 1, %s722_s16  ;;  %p601_p0 = scmp.ge.s32.totalorder %s726_s17, 1  ;;  %s726_s17 = sphi %s757_s17, %s14_s17   ;;  %s722_s16 = sphi %s755_s16, %s850_s16   ;;  %s718_s15 = sphi %s753_s15, %s849_s15  }
   0x3   : > { %p28_p1 = scmp.ge.s32.totalorder %s26_s18, 2  ;;  %p187_p2 = scmp.lt.s32.totalorder %s726_s17, 3 }
   0x5   : > { %s852_s18 = smov (%p28_p1, %s26_s18), 0  ;;  %p188_p3 = pnand %p601_p0, %p187_p2 }
   0x6   : > { %p222_p4 = scmp.lt.s32.totalorder (!%p188_p3), %s718_s15, 1 }
   0x7   : > { %191 = sbr.rel (%p188_p3) target bundleno = 440 (0x1b8), region = 36 }
   0xc   : > { %v252_v0 = vld [vmem:[%s845_s1 + $0x18] sm:$0xff]  ;;  %v251_v1 = vld [vmem:[%s845_s1 + $0x10] sm:$0xff]  ;;  %v250_v2 = vld [vmem:[%s845_s1 + $0x8] sm:$0xff]  ;;  %s854_s15 = smov (!%p222_p4, %s718_s15), 1  ;;  %vm266_vm0 = vcmask 261120   ;;  %vm380_vm1 = vcmask 392192  }
   0xd   : > { %641 = vmatprep.subr.mxu0 %v252_v0  ;;  %v249_v3 = vld [vmem:[%s845_s1] sm:$0xff]  ;;  %s679_s27 = smul.u32 48, %s854_s15  ;;  %v244_v17 = vld [vmem:[%s846_s2 + $0x8] sm:$0xff]  ;;  %v245_v18 = vld [vmem:[%s846_s2 + $0x10] sm:$0xff] }
   0xe   : > { %642 = vmatpush3.msra.mxu0 %v252_v0  ;;  %v243_v10 = vld [vmem:[%s846_s2] sm:$0xff]  ;;  %v246_v19 = vld [vmem:[%s846_s2 + $0x18] sm:$0xff]  ;;  %v248_v21 = vld [vmem:[%s846_s2 + $0x28] sm:$0xff] }
   0xf   : > { %643 = vmatprep.subr.mxu0 %v251_v1  ;;  %s226_s30 = scalar_lea.vmem %s844_s0, %s679_s27  ;;  %670 = vmatprep.mubr.msk.f32.mxu1 %vm380_vm1, %v243_v10  ;;  %v247_v20 = vld [vmem:[%s846_s2 + $0x20] sm:$0xff]  ;;  %s241_s25 = scalar_lea.vmem %s848_s4, %s679_s27 }
  0x10   : > { %644 = vmatpush3.msra.mxu0 %v251_v1  ;;  %v260_v4 = vld [vmem:[%s226_s30] sm:$0xff]  ;;  %v261_v5 = vld [vmem:[%s226_s30 + $0x8] sm:$0xff]  ;;  %v262_v6 = vld [vmem:[%s226_s30 + $0x10] sm:$0xff] }
  0x11   : > { %645 = vmatprep.subr.mxu0 %v250_v2  ;;  %649 = vmatprep.mubr.msk.f32.mxu0 %vm266_vm0, %v260_v4  ;;  %v263_v7 = vld [vmem:[%s226_s30 + $0x18] sm:$0xff]  ;;  %v264_v8 = vld [vmem:[%s226_s30 + $0x20] sm:$0xff]  ;;  %v265_v9 = vld [vmem:[%s226_s30 + $0x28] sm:$0xff] }
  0x12   : > { %646 = vmatpush3.msra.mxu0 %v250_v2  ;;  %v604_v22 = vld [vmem:[%s847_s3] ss:$0 sm:$0xff] }
  0x13   : > { %647 = vmatprep.subr.mxu0 %v249_v3 }
  0x14   : > { %648 = vmatpush3.msra.mxu0 %v249_v3 }
  0x15   : > { %650 = vmatmul.mubr.msk.f32.vlgmr.msra.gmra.mxu0 %vm266_vm0, %v261_v5 }
  0x16   : > { %652 = vmatprep.mubr.msk.f32.mxu0 %vm266_vm0, %v262_v6 }
  0x19   : > { %653 = vmatmul.mubr.msk.f32.gmra.mxu0 %vm266_vm0, %v263_v7 }
  0x1a   : > { %655 = vmatprep.mubr.msk.f32.mxu0 %vm266_vm0, %v264_v8 }
  0x1d   : > { %656 = vmatmul.mubr.msk.f32.gmra.mxu0 %vm266_vm0, %v265_v9 }
  0xd5   : > { %v651_v11 = vpop.f32.mrf.mxu0 }
  0xd7   : > { %v351_v12 = vpop.f32.mrf.mxu0 }
  0xd9   : > { %v654_v13 = vpop.f32.mrf.mxu0 }
  0xdb   : > { %v361_v14 = vpop.f32.mrf.mxu0 }
  0xdd   : > { %v657_v15 = vpop.f32.mrf.mxu0 }
  0xde   : > { %658 = vmatprep.subr.mxu1 %v657_v15 }
  0xdf   : > { %v371_v16 = vpop.f32.mrf.mxu0  ;;  %659 = vmatpush3.msra.mxu1 %v657_v15 }
  0xe0   : > { %660 = vmatprep.subr.mxu1 %v371_v16 }
  0xe1   : > { %661 = vmatpush3.msra.mxu1 %v371_v16 }
  0xe2   : > { %662 = vmatprep.subr.mxu1 %v654_v13 }
  0xe3   : > { %663 = vmatpush3.msra.mxu1 %v654_v13 }
  0xe4   : > { %664 = vmatprep.subr.mxu1 %v361_v14 }
  0xe5   : > { %665 = vmatpush3.msra.mxu1 %v361_v14 }
  0xe6   : > { %666 = vmatprep.subr.mxu1 %v651_v11 }
  0xe7   : > { %667 = vmatpush3.msra.mxu1 %v651_v11 }
  0xe8   : > { %668 = vmatprep.subr.mxu1 %v351_v12 }
  0xe9   : > { %669 = vmatpush3.msra.mxu1 %v351_v12 }
  0xea   : > { %671 = vmatmul.mubr.msk.f32.vlgmr.msra.gmra.mxu1 %vm380_vm1, %v244_v17 }
  0xeb   : > { %673 = vmatprep.mubr.msk.f32.mxu1 %vm380_vm1, %v245_v18 }
  0xee   : > { %674 = vmatmul.mubr.msk.f32.gmra.mxu1 %vm380_vm1, %v246_v19 }
  0xef   : > { %676 = vmatprep.mubr.msk.f32.mxu1 %vm380_vm1, %v247_v20 }
  0xf2   : > { %677 = vmatmul.mubr.msk.f32.gmra.mxu1 %vm380_vm1, %v248_v21 }
 0x1aa   : > { %v672_v23 = vpop.f32.mrf.mxu1 }
 0x1ab   : > { %v471_v24 = vadd.f32 %v672_v23, %v604_v22 }
 0x1ac   : > { %v465_v25 = vpop.f32.mrf.mxu1 }
 0x1ad   : > { %495 = vst.msk [vmem:[%s241_s25 + $0x8] sm:$0xff] %vm266_vm0, %v471_v24  ;;  %v466_v26 = vadd.f32 %v604_v22, %v465_v25 }
 0x1ae   : > { %v675_v27 = vpop.f32.mrf.mxu1 }
 0x1af   : > { %494 = vst.msk [vmem:[%s241_s25] sm:$0xff] %vm266_vm0, %v466_v26  ;;  %v481_v28 = vadd.f32 %v675_v27, %v604_v22 }
 0x1b0   : > { %v475_v29 = vpop.f32.mrf.mxu1 }
 0x1b1   : > { %497 = vst.msk [vmem:[%s241_s25 + $0x18] sm:$0xff] %vm266_vm0, %v481_v28  ;;  %v476_v30 = vadd.f32 %v604_v22, %v475_v29 }
 0x1b2   : > { %v678_v31 = vpop.f32.mrf.mxu1 }
 0x1b3   : > { %496 = vst.msk [vmem:[%s241_s25 + $0x10] sm:$0xff] %vm266_vm0, %v476_v30  ;;  %v491_v32 = vadd.f32 %v678_v31, %v604_v22 }
 0x1b4   : > { %v485_v33 = vpop.f32.mrf.mxu1 }
 0x1b5   : > { %499 = vst.msk [vmem:[%s241_s25 + $0x28] sm:$0xff] %vm266_vm0, %v491_v32  ;;  %v486_v34 = vadd.f32 %v604_v22, %v485_v33 }
 0x1b7   : > { %498 = vst.msk [vmem:[%s241_s25 + $0x20] sm:$0xff] %vm266_vm0, %v486_v34 }
 0x1b8 PF: > { %s14_s17 = sadd.s32 1, %s726_s17   ;;  %s849_s15 = smov %s722_s16 }
 0x1b9   : > { %p11_p5 = scmp.ge.s32.totalorder %s14_s17, 4   ;;  %s850_s16 = smov %s852_s18 }
 0x1bb   :  { %13 = sbr.rel (!%p11_p5) target bundleno = 2 (0x2), region = 69 }

</bundles_post_ra>
